<compile_context>
chip_gen: v7x
topology: tpu7x:2x2x1
jax: 0.10.0
libtpu: 0.0.40
codegen_flags: <defaults>
</compile_context>

<pallas_src>
import functools

import jax
import jax.numpy as jnp
from jax.experimental import pallas as pl
from jax.experimental.pallas import tpu as pltpu

LN_EPS = 1e-5

# bf16 operands for the big generator matmuls (2x MXU rate, half the weight
# bytes). Set to jnp.float32 for bit-faithful f32 matmuls.
GEN_MATMUL_DTYPE = jnp.bfloat16


# ---------------------------------------------------------------------------
# shared math (used inside the Pallas kernel and in the jnp reference)
# ---------------------------------------------------------------------------
def _gelu_exact(h):
    # PyTorch nn.GELU() default (approximate='none'): 0.5*x*(1+erf(x/sqrt(2)))
    return 0.5 * h * (1.0 + jax.lax.erf(h * 0.7071067811865476))


def _layernorm(h, gamma, beta):
    # Two-pass statistics (biased variance), matching nn.LayerNorm.
    mu = jnp.mean(h, axis=-1, keepdims=True)
    d = h - mu
    var = jnp.mean(d * d, axis=-1, keepdims=True)
    return d * jax.lax.rsqrt(var + LN_EPS) * gamma + beta


def _round_up(x, m):
    return ((x + m - 1) // m) * m


# ---------------------------------------------------------------------------
# fused dual-generator MLP kernel:
#   grid = (generator g in {fwd,bwd}, batch tile i)
#   per hidden layer: Linear -> Dropout(id) -> LayerNorm -> GELU ; final Linear
# ---------------------------------------------------------------------------
def make_dual_mlp_kernel(n_hidden):
    def kernel(x_ref, *refs):
        o_ref = refs[-1]
        h = x_ref[0]                                  # (tb, fin), f32
        idx = 0
        for _ in range(n_hidden):
            w_ref, b_ref, g_ref, be_ref = refs[idx:idx + 4]
            idx += 4
            z = jnp.dot(h.astype(w_ref.dtype), w_ref[0],
                        preferred_element_type=jnp.float32) + b_ref[0]
            # nn.Dropout(0.1): identity in eval mode.
            # TODO(synk): training-mode dropout would need pltpu.prng_seed /
            #             pltpu.stateful_bernoulli.
            z = _layernorm(z, g_ref[0], be_ref[0])
            h = _gelu_exact(z)
        w_ref, b_ref = refs[idx], refs[idx + 1]
        y = jnp.dot(h.astype(w_ref.dtype), w_ref[0],
                    preferred_element_type=jnp.float32) + b_ref[0]
        o_ref[0] = y.astype(o_ref.dtype)

    return kernel


def dual_mlp_forward(x2, params2, *, hidden_matmul_dtype=GEN_MATMUL_DTYPE,
                     tb_max=256, vmem_limit_bytes=48 * 1024 * 1024):
    """Runs the forward AND backward generator stacks in ONE fused pallas_call.

    x2:      (2, B, fin)  stacked [start_encoding, end_encoding]
    params2: (hidden, out_w, out_b); every tensor has a leading generator axis
             of size 2 and out_w/out_b are zero-padded to a lane-dense width.
    Returns  (2, B, fout_padded) float32.
    """
    hidden, out_w, out_b = params2
    _, B, fin = x2.shape
    fout_pad = out_w.shape[-1]

    flat = []
    for (w, b, g, be) in hidden:
        flat += [w.astype(hidden_matmul_dtype), b, g, be]
    flat += [out_w, out_b]                 # final projection kept in f32

    # Batch tiling: largest tile <= tb_max, batch padded UP to a multiple of
    # it (padded rows ride along nearly for free in this weight-bound regime).
    tb = min(_round_up(B, 8), tb_max)
    bp = _round_up(B, tb)
    xp = x2 if bp == B else jnp.pad(x2, ((0, 0), (0, bp - B), (0, 0)))

    in_specs = [pl.BlockSpec((1, tb, fin), lambda g, i: (g, i, 0))]
    # Weights / biases / LN params: whole per-generator slab, constant over the
    # batch-tile axis -> fetched once per generator, next generator's slab is
    # prefetched while the current one computes.
    for p in flat:
        in_specs.append(pl.BlockSpec((1,) + p.shape[1:], lambda g, i: (g, 0, 0)))

    out = pl.pallas_call(
        make_dual_mlp_kernel(len(hidden)),
        out_shape=jax.ShapeDtypeStruct((2, bp, fout_pad), jnp.float32),
        grid_spec=pltpu.PrefetchScalarGridSpec(
            num_scalar_prefetch=0,
            grid=(2, bp // tb),
            in_specs=in_specs,
            out_specs=pl.BlockSpec((1, tb, fout_pad), lambda g, i: (g, i, 0)),
        ),
        compiler_params=pltpu.CompilerParams(
            # Both grid axes are independent; "parallel" on the generator axis
            # lets v7x's two TensorCores each take one generator.
            dimension_semantics=("parallel", "parallel"),
            vmem_limit_bytes=vmem_limit_bytes,    # <= v7x 64 MiB physical VMEM
        ),
    )(xp, *flat)
    return out[:, :B]


# ---------------------------------------------------------------------------
# tiny fusion network (Linear -> LayerNorm -> GELU -> Linear): plain jnp
# ---------------------------------------------------------------------------
def fusion_forward(x, params):
    hidden, out_w, out_b = params
    h = x
    for (w, b, g, be) in hidden:
        z = jnp.dot(h, w, preferred_element_type=jnp.float32) + b
        z = _layernorm(z, g, be)
        h = _gelu_exact(z)
    return jnp.dot(h, out_w, preferred_element_type=jnp.float32) + out_b


# ---------------------------------------------------------------------------
# parameter stacking / padding for the fused dual-generator call
# ---------------------------------------------------------------------------
def _stack_and_pad_generator_params(fwd_p, bwd_p, fout):
    fh, fw, fob = fwd_p
    bh, bw, bob = bwd_p
    hidden = []
    for (wf, bf, gf, bef), (wb, bb, gb, beb) in zip(fh, bh):
        hidden.append((jnp.stack([wf, wb]), jnp.stack([bf, bb]),
                       jnp.stack([gf, gb]), jnp.stack([bef, beb])))
    fout_pad = _round_up(fout, 128)
    ow = jnp.stack([fw, bw])
    ob = jnp.stack([fob, bob])
    pad = fout_pad - fout
    if pad:
        # Zero-pad the output columns -> lane-dense (multiple-of-128) stores.
        ow = jnp.pad(ow, ((0, 0), (0, 0), (0, pad)))
        ob = jnp.pad(ob, ((0, 0), (0, 0), (0, pad)))
    return (tuple(hidden), ow, ob), fout_pad


# ---------------------------------------------------------------------------
# BidirectionalPathGenerator forward
# ---------------------------------------------------------------------------
def bidirectional_path_generator(start_enc, end_enc, fwd_p, bwd_p, fus_p, *,
                                 seq_len, output_size):
    B = start_enc.shape[0]
    half = (seq_len + 1) // 2
    fout = output_size * half

    x2 = jnp.stack([start_enc, end_enc], axis=0)
    params2, _ = _stack_and_pad_generator_params(fwd_p, bwd_p, fout)

    both = dual_mlp_forward(x2, params2)          # (2, B, fout_pad)
    both = both[..., :fout]                       # drop lane padding
    f_traj = both[0].reshape(B, half, output_size)
    b_traj = both[1].reshape(B, half, output_size)[:, ::-1, :]   # torch.flip(dims=[1])

    fusion_in = jnp.concatenate([f_traj[:, -1, :], b_traj[:, 0, :]], axis=-1)
    fusion_pt = fusion_forward(fusion_in, fus_p)

    # Trajectory splice: pure data movement, left as thin JAX glue.
    full = jnp.concatenate(
        [f_traj[:, :-1, :], fusion_pt[:, None, :], b_traj[:, 1:, :]], axis=1)
    actual = full.shape[1]
    if actual < seq_len:
        full = jnp.concatenate([full, full[:, -1:, :]], axis=1)
    elif actual > seq_len:
        full = full[:, :seq_len, :]
    return full


# ---------------------------------------------------------------------------
# plain-jnp reference with the same numerics (same bf16 casts) as the kernel
# ---------------------------------------------------------------------------
def mlp_forward_ref(x, params, *, hidden_matmul_dtype=jnp.float32):
    hidden, out_w, out_b = params
    h = x
    for (w, b, g, be) in hidden:
        wc = w.astype(hidden_matmul_dtype)
        z = jnp.dot(h.astype(wc.dtype), wc, preferred_element_type=jnp.float32) + b
        z = _layernorm(z, g, be)
        h = _gelu_exact(z)
    return jnp.dot(h.astype(out_w.dtype), out_w,
                   preferred_element_type=jnp.float32) + out_b


def bidirectional_path_generator_ref(start_enc, end_enc, fwd_p, bwd_p, fus_p, *,
                                     seq_len, output_size):
    B = start_enc.shape[0]
    half = (seq_len + 1) // 2
    f_flat = mlp_forward_ref(start_enc, fwd_p, hidden_matmul_dtype=GEN_MATMUL_DTYPE)
    b_flat = mlp_forward_ref(end_enc, bwd_p, hidden_matmul_dtype=GEN_MATMUL_DTYPE)
    f_traj = f_flat.reshape(B, half, output_size)
    b_traj = b_flat.reshape(B, half, output_size)[:, ::-1, :]
    fusion_in = jnp.concatenate([f_traj[:, -1, :], b_traj[:, 0, :]], axis=-1)
    fusion_pt = fusion_forward(fusion_in, fus_p)
    full = jnp.concatenate(
        [f_traj[:, :-1, :], fusion_pt[:, None, :], b_traj[:, 1:, :]], axis=1)
    actual = full.shape[1]
    if actual < seq_len:
        full = jnp.concatenate([full, full[:, -1:, :]], axis=1)
    elif actual > seq_len:
        full = full[:, :seq_len, :]
    return full


# ---------------------------------------------------------------------------
# parameter init mimicking PyTorch defaults (U(+-1/sqrt(fan_in)); LN gamma=1)
# ---------------------------------------------------------------------------
def init_mlp_params(key, input_size, hidden_sizes, output_size):
    dims = [input_size] + list(hidden_sizes)
    keys = jax.random.split(key, 2 * (len(hidden_sizes) + 1))
    hidden = []
    for li, (fin, fout) in enumerate(zip(dims[:-1], dims[1:])):
        bound = 1.0 / (fin ** 0.5)
        w = jax.random.uniform(keys[2 * li], (fin, fout), jnp.float32, -bound, bound)
        b = jax.random.uniform(keys[2 * li + 1], (1, fout), jnp.float32, -bound, bound)
        g = jnp.ones((1, fout), jnp.float32)
        be = jnp.zeros((1, fout), jnp.float32)
        hidden.append((w, b, g, be))
    fin = dims[-1]
    bound = 1.0 / (fin ** 0.5)
    w_out = jax.random.uniform(keys[-2], (fin, output_size), jnp.float32, -bound, bound)
    b_out = jax.random.uniform(keys[-1], (1, output_size), jnp.float32, -bound, bound)
    return (tuple(hidden), w_out, b_out)


# ---------------------------------------------------------------------------
if __name__ == "__main__":
    # Small shapes consistent with the module (full defaults would be
    # input=32, hidden=[1280,...,256], seq_len=30).
    INPUT_SIZE = 16      # start/end encoding width
    OUTPUT_SIZE = 8      # joint dimension per trajectory point
    SEQ_LEN = 8
    HIDDEN_SIZES = [256, 128]
    B = 4

    key = jax.random.PRNGKey(0)
    k_fwd, k_bwd, k_fus, k_s, k_e = jax.random.split(key, 5)

    half = (SEQ_LEN + 1) // 2
    fwd_params = init_mlp_params(k_fwd, INPUT_SIZE, HIDDEN_SIZES, OUTPUT_SIZE * half)
    bwd_params = init_mlp_params(k_bwd, INPUT_SIZE, HIDDEN_SIZES, OUTPUT_SIZE * half)
    fus_params = init_mlp_params(k_fus, 2 * OUTPUT_SIZE, [OUTPUT_SIZE], OUTPUT_SIZE)

    start_encoding = jax.random.normal(k_s, (B, INPUT_SIZE), jnp.float32)
    end_encoding = jax.random.normal(k_e, (B, INPUT_SIZE), jnp.float32)

    model = jax.jit(functools.partial(bidirectional_path_generator,
                                      seq_len=SEQ_LEN, output_size=OUTPUT_SIZE))
    out = model(start_encoding, end_encoding, fwd_params, bwd_params, fus_params)
    out = jax.block_until_ready(out)

    ref = bidirectional_path_generator_ref(start_encoding, end_encoding,
                                           fwd_params, bwd_params, fus_params,
                                           seq_len=SEQ_LEN, output_size=OUTPUT_SIZE)

    assert out.shape == (B, SEQ_LEN, OUTPUT_SIZE), out.shape
    assert jnp.allclose(out, ref, rtol=1e-2, atol=1e-2), "mismatch vs JAX reference"

    print("KERNEL_OK")
</pallas_src>

<mosaic_0001>
module attributes {stable_mosaic.version = 11 : i64} {
  func.func @kernel(%arg0: i32, %arg1: i32, %arg2: memref<1x8x16xf32, #tpu.memory_space<vmem>>, %arg3: memref<1x16x256xbf16, #tpu.memory_space<vmem>>, %arg4: memref<1x1x256xf32, #tpu.memory_space<vmem>>, %arg5: memref<1x1x256xf32, #tpu.memory_space<vmem>>, %arg6: memref<1x1x256xf32, #tpu.memory_space<vmem>>, %arg7: memref<1x256x128xbf16, #tpu.memory_space<vmem>>, %arg8: memref<1x1x128xf32, #tpu.memory_space<vmem>>, %arg9: memref<1x1x128xf32, #tpu.memory_space<vmem>>, %arg10: memref<1x1x128xf32, #tpu.memory_space<vmem>>, %arg11: memref<1x128x128xf32, #tpu.memory_space<vmem>>, %arg12: memref<1x1x128xf32, #tpu.memory_space<vmem>>, %arg13: memref<1x8x128xf32, #tpu.memory_space<vmem>>) attributes {dimension_semantics = [#tpu.dimension_semantics<parallel>, #tpu.dimension_semantics<parallel>], iteration_bounds = array<i64: 2, 1>, scalar_prefetch = 0 : i64, scratch_operands = 0 : i64, tpu.core_type = #tpu.core_type<tc>, window_params = [{transform_indices = @transform_0, window_bounds = array<i64: 1, 8, 16>}, {transform_indices = @transform_1, window_bounds = array<i64: 1, 16, 256>}, {transform_indices = @transform_2, window_bounds = array<i64: 1, 1, 256>}, {transform_indices = @transform_3, window_bounds = array<i64: 1, 1, 256>}, {transform_indices = @transform_4, window_bounds = array<i64: 1, 1, 256>}, {transform_indices = @transform_5, window_bounds = array<i64: 1, 256, 128>}, {transform_indices = @transform_6, window_bounds = array<i64: 1, 1, 128>}, {transform_indices = @transform_7, window_bounds = array<i64: 1, 1, 128>}, {transform_indices = @transform_8, window_bounds = array<i64: 1, 1, 128>}, {transform_indices = @transform_9, window_bounds = array<i64: 1, 128, 128>}, {transform_indices = @transform_10, window_bounds = array<i64: 1, 1, 128>}, {transform_indices = @transform_11, window_bounds = array<i64: 1, 8, 128>}]} {
    %c0 = arith.constant 0 : index
    %c0_0 = arith.constant 0 : index
    %c0_1 = arith.constant 0 : index
    %0 = vector.load %arg2[%c0, %c0_0, %c0_1] : memref<1x8x16xf32, #tpu.memory_space<vmem>>, vector<1x8x16xf32>
    %1 = vector.shape_cast %0 : vector<1x8x16xf32> to vector<8x16xf32>
    %2 = arith.truncf %1 : vector<8x16xf32> to vector<8x16xbf16>
    %c0_2 = arith.constant 0 : index
    %c0_3 = arith.constant 0 : index
    %c0_4 = arith.constant 0 : index
    %3 = vector.load %arg3[%c0_2, %c0_3, %c0_4] : memref<1x16x256xbf16, #tpu.memory_space<vmem>>, vector<1x16x256xbf16>
    %4 = vector.shape_cast %3 : vector<1x16x256xbf16> to vector<16x256xbf16>
    %cst = arith.constant dense<0.000000e+00> : vector<8x256xf32>
    %5 = tpu.matmul %2, %4, %cst {dimension_numbers = #tpu.dot_dimension_numbers<[1], [0], [0], [1], [0, 0, 1, 1], [], []>} : vector<8x16xbf16>, vector<16x256xbf16>, vector<8x256xf32> -> vector<8x256xf32>
    %c0_5 = arith.constant 0 : index
    %c0_6 = arith.constant 0 : index
    %c0_7 = arith.constant 0 : index
    %6 = vector.load %arg4[%c0_5, %c0_6, %c0_7] : memref<1x1x256xf32, #tpu.memory_space<vmem>>, vector<1x1x256xf32>
    %7 = vector.shape_cast %6 : vector<1x1x256xf32> to vector<1x256xf32>
    %8 = vector.broadcast %7 : vector<1x256xf32> to vector<8x256xf32>
    %9 = arith.addf %5, %8 : vector<8x256xf32>
    %c0_8 = arith.constant 0 : index
    %c0_9 = arith.constant 0 : index
    %c0_10 = arith.constant 0 : index
    %10 = vector.load %arg5[%c0_8, %c0_9, %c0_10] : memref<1x1x256xf32, #tpu.memory_space<vmem>>, vector<1x1x256xf32>
    %11 = vector.shape_cast %10 : vector<1x1x256xf32> to vector<1x256xf32>
    %c0_11 = arith.constant 0 : index
    %c0_12 = arith.constant 0 : index
    %c0_13 = arith.constant 0 : index
    %12 = vector.load %arg6[%c0_11, %c0_12, %c0_13] : memref<1x1x256xf32, #tpu.memory_space<vmem>>, vector<1x1x256xf32>
    %13 = vector.shape_cast %12 : vector<1x1x256xf32> to vector<1x256xf32>
    %cst_14 = arith.constant dense<0.000000e+00> : vector<8xf32>
    %14 = vector.multi_reduction <add>, %9, %cst_14 [1] : vector<8x256xf32> to vector<8xf32>
    %15 = vector.shape_cast %14 : vector<8xf32> to vector<8x1xf32>
    %cst_15 = arith.constant 2.560000e+02 : f32
    %16 = vector.broadcast %cst_15 : f32 to vector<8x1xf32>
    %17 = arith.divf %15, %16 : vector<8x1xf32>
    %18 = vector.broadcast %17 : vector<8x1xf32> to vector<8x256xf32>
    %19 = arith.subf %9, %18 : vector<8x256xf32>
    %20 = arith.mulf %19, %19 : vector<8x256xf32>
    %cst_16 = arith.constant dense<0.000000e+00> : vector<8xf32>
    %21 = vector.multi_reduction <add>, %20, %cst_16 [1] : vector<8x256xf32> to vector<8xf32>
    %22 = vector.shape_cast %21 : vector<8xf32> to vector<8x1xf32>
    %cst_17 = arith.constant 2.560000e+02 : f32
    %23 = vector.broadcast %cst_17 : f32 to vector<8x1xf32>
    %24 = arith.divf %22, %23 : vector<8x1xf32>
    %cst_18 = arith.constant 9.99999974E-6 : f32
    %25 = vector.broadcast %cst_18 : f32 to vector<8x1xf32>
    %26 = arith.addf %24, %25 : vector<8x1xf32>
    %27 = math.rsqrt %26 : vector<8x1xf32>
    %28 = vector.broadcast %27 : vector<8x1xf32> to vector<8x256xf32>
    %29 = arith.mulf %19, %28 : vector<8x256xf32>
    %30 = vector.broadcast %11 : vector<1x256xf32> to vector<8x256xf32>
    %31 = arith.mulf %29, %30 : vector<8x256xf32>
    %32 = vector.broadcast %13 : vector<1x256xf32> to vector<8x256xf32>
    %33 = arith.addf %31, %32 : vector<8x256xf32>
    %cst_19 = arith.constant 5.000000e-01 : f32
    %34 = vector.broadcast %cst_19 : f32 to vector<8x256xf32>
    %35 = arith.mulf %34, %33 : vector<8x256xf32>
    %cst_20 = arith.constant 0.707106769 : f32
    %36 = vector.broadcast %cst_20 : f32 to vector<8x256xf32>
    %37 = arith.mulf %33, %36 : vector<8x256xf32>
    %38 = math.erf %37 : vector<8x256xf32>
    %cst_21 = arith.constant 1.000000e+00 : f32
    %39 = vector.broadcast %cst_21 : f32 to vector<8x256xf32>
    %40 = arith.addf %39, %38 : vector<8x256xf32>
    %41 = arith.mulf %35, %40 : vector<8x256xf32>
    %42 = arith.truncf %41 : vector<8x256xf32> to vector<8x256xbf16>
    %c0_22 = arith.constant 0 : index
    %c0_23 = arith.constant 0 : index
    %c0_24 = arith.constant 0 : index
    %43 = vector.load %arg7[%c0_22, %c0_23, %c0_24] : memref<1x256x128xbf16, #tpu.memory_space<vmem>>, vector<1x256x128xbf16>
    %44 = vector.shape_cast %43 : vector<1x256x128xbf16> to vector<256x128xbf16>
    %cst_25 = arith.constant dense<0.000000e+00> : vector<8x128xf32>
    %45 = tpu.matmul %42, %44, %cst_25 {dimension_numbers = #tpu.dot_dimension_numbers<[1], [0], [0], [1], [0, 0, 1, 1], [], []>} : vector<8x256xbf16>, vector<256x128xbf16>, vector<8x128xf32> -> vector<8x128xf32>
    %c0_26 = arith.constant 0 : index
    %c0_27 = arith.constant 0 : index
    %c0_28 = arith.constant 0 : index
    %46 = vector.load %arg8[%c0_26, %c0_27, %c0_28] : memref<1x1x128xf32, #tpu.memory_space<vmem>>, vector<1x1x128xf32>
    %47 = vector.shape_cast %46 : vector<1x1x128xf32> to vector<1x128xf32>
    %48 = vector.broadcast %47 : vector<1x128xf32> to vector<8x128xf32>
    %49 = arith.addf %45, %48 : vector<8x128xf32>
    %c0_29 = arith.constant 0 : index
    %c0_30 = arith.constant 0 : index
    %c0_31 = arith.constant 0 : index
    %50 = vector.load %arg9[%c0_29, %c0_30, %c0_31] : memref<1x1x128xf32, #tpu.memory_space<vmem>>, vector<1x1x128xf32>
    %51 = vector.shape_cast %50 : vector<1x1x128xf32> to vector<1x128xf32>
    %c0_32 = arith.constant 0 : index
    %c0_33 = arith.constant 0 : index
    %c0_34 = arith.constant 0 : index
    %52 = vector.load %arg10[%c0_32, %c0_33, %c0_34] : memref<1x1x128xf32, #tpu.memory_space<vmem>>, vector<1x1x128xf32>
    %53 = vector.shape_cast %52 : vector<1x1x128xf32> to vector<1x128xf32>
    %cst_35 = arith.constant dense<0.000000e+00> : vector<8xf32>
    %54 = vector.multi_reduction <add>, %49, %cst_35 [1] : vector<8x128xf32> to vector<8xf32>
    %55 = vector.shape_cast %54 : vector<8xf32> to vector<8x1xf32>
    %cst_36 = arith.constant 1.280000e+02 : f32
    %56 = vector.broadcast %cst_36 : f32 to vector<8x1xf32>
    %57 = arith.divf %55, %56 : vector<8x1xf32>
    %58 = vector.broadcast %57 : vector<8x1xf32> to vector<8x128xf32>
    %59 = arith.subf %49, %58 : vector<8x128xf32>
    %60 = arith.mulf %59, %59 : vector<8x128xf32>
    %cst_37 = arith.constant dense<0.000000e+00> : vector<8xf32>
    %61 = vector.multi_reduction <add>, %60, %cst_37 [1] : vector<8x128xf32> to vector<8xf32>
    %62 = vector.shape_cast %61 : vector<8xf32> to vector<8x1xf32>
    %cst_38 = arith.constant 1.280000e+02 : f32
    %63 = vector.broadcast %cst_38 : f32 to vector<8x1xf32>
    %64 = arith.divf %62, %63 : vector<8x1xf32>
    %cst_39 = arith.constant 9.99999974E-6 : f32
    %65 = vector.broadcast %cst_39 : f32 to vector<8x1xf32>
    %66 = arith.addf %64, %65 : vector<8x1xf32>
    %67 = math.rsqrt %66 : vector<8x1xf32>
    %68 = vector.broadcast %67 : vector<8x1xf32> to vector<8x128xf32>
    %69 = arith.mulf %59, %68 : vector<8x128xf32>
    %70 = vector.broadcast %51 : vector<1x128xf32> to vector<8x128xf32>
    %71 = arith.mulf %69, %70 : vector<8x128xf32>
    %72 = vector.broadcast %53 : vector<1x128xf32> to vector<8x128xf32>
    %73 = arith.addf %71, %72 : vector<8x128xf32>
    %cst_40 = arith.constant 5.000000e-01 : f32
    %74 = vector.broadcast %cst_40 : f32 to vector<8x128xf32>
    %75 = arith.mulf %74, %73 : vector<8x128xf32>
    %cst_41 = arith.constant 0.707106769 : f32
    %76 = vector.broadcast %cst_41 : f32 to vector<8x128xf32>
    %77 = arith.mulf %73, %76 : vector<8x128xf32>
    %78 = math.erf %77 : vector<8x128xf32>
    %cst_42 = arith.constant 1.000000e+00 : f32
    %79 = vector.broadcast %cst_42 : f32 to vector<8x128xf32>
    %80 = arith.addf %79, %78 : vector<8x128xf32>
    %81 = arith.mulf %75, %80 : vector<8x128xf32>
    %c0_43 = arith.constant 0 : index
    %c0_44 = arith.constant 0 : index
    %c0_45 = arith.constant 0 : index
    %82 = vector.load %arg11[%c0_43, %c0_44, %c0_45] : memref<1x128x128xf32, #tpu.memory_space<vmem>>, vector<1x128x128xf32>
    %83 = vector.shape_cast %82 : vector<1x128x128xf32> to vector<128x128xf32>
    %cst_46 = arith.constant dense<0.000000e+00> : vector<8x128xf32>
    %84 = tpu.matmul %81, %83, %cst_46 {dimension_numbers = #tpu.dot_dimension_numbers<[1], [0], [0], [1], [0, 0, 1, 1], [], []>} : vector<8x128xf32>, vector<128x128xf32>, vector<8x128xf32> -> vector<8x128xf32>
    %c0_47 = arith.constant 0 : index
    %c0_48 = arith.constant 0 : index
    %c0_49 = arith.constant 0 : index
    %85 = vector.load %arg12[%c0_47, %c0_48, %c0_49] : memref<1x1x128xf32, #tpu.memory_space<vmem>>, vector<1x1x128xf32>
    %86 = vector.shape_cast %85 : vector<1x1x128xf32> to vector<1x128xf32>
    %87 = vector.broadcast %86 : vector<1x128xf32> to vector<8x128xf32>
    %88 = arith.addf %84, %87 : vector<8x128xf32>
    %c0_50 = arith.constant 0 : index
    %c0_51 = arith.constant 0 : index
    %c0_52 = arith.constant 0 : index
    %89 = vector.load %arg13[%c0_50, %c0_51, %c0_52] : memref<1x8x128xf32, #tpu.memory_space<vmem>>, vector<1x8x128xf32>
    %90 = vector.shape_cast %89 : vector<1x8x128xf32> to vector<8x128xf32>
    %91 = vector.shape_cast %88 : vector<8x128xf32> to vector<1x8x128xf32>
    tpu.vector_store %arg13[%c0_50, %c0_51, %c0_52], %91 {strides = array<i32>} : memref<1x8x128xf32, #tpu.memory_space<vmem>>, vector<1x8x128xf32>,
    return
  }
  func.func @transform_0(%arg0: i32, %arg1: i32) -> (i32, i32, i32) {
    %c0_i32 = arith.constant 0 : i32
    %c0_i32_0 = arith.constant 0 : i32
    return %arg0, %arg1, %c0_i32 : i32, i32, i32
  }
  func.func @transform_1(%arg0: i32, %arg1: i32) -> (i32, i32, i32) {
    %c0_i32 = arith.constant 0 : i32
    %c0_i32_0 = arith.constant 0 : i32
    %c0_i32_1 = arith.constant 0 : i32
    return %arg0, %c0_i32, %c0_i32_0 : i32, i32, i32
  }
  func.func @transform_2(%arg0: i32, %arg1: i32) -> (i32, i32, i32) {
    %c0_i32 = arith.constant 0 : i32
    %c0_i32_0 = arith.constant 0 : i32
    %c0_i32_1 = arith.constant 0 : i32
    return %arg0, %c0_i32, %c0_i32_0 : i32, i32, i32
  }
  func.func @transform_3(%arg0: i32, %arg1: i32) -> (i32, i32, i32) {
    %c0_i32 = arith.constant 0 : i32
    %c0_i32_0 = arith.constant 0 : i32
    %c0_i32_1 = arith.constant 0 : i32
    return %arg0, %c0_i32, %c0_i32_0 : i32, i32, i32
  }
  func.func @transform_4(%arg0: i32, %arg1: i32) -> (i32, i32, i32) {
    %c0_i32 = arith.constant 0 : i32
    %c0_i32_0 = arith.constant 0 : i32
    %c0_i32_1 = arith.constant 0 : i32
    return %arg0, %c0_i32, %c0_i32_0 : i32, i32, i32
  }
  func.func @transform_5(%arg0: i32, %arg1: i32) -> (i32, i32, i32) {
    %c0_i32 = arith.constant 0 : i32
    %c0_i32_0 = arith.constant 0 : i32
    %c0_i32_1 = arith.constant 0 : i32
    return %arg0, %c0_i32, %c0_i32_0 : i32, i32, i32
  }
  func.func @transform_6(%arg0: i32, %arg1: i32) -> (i32, i32, i32) {
    %c0_i32 = arith.constant 0 : i32
    %c0_i32_0 = arith.constant 0 : i32
    %c0_i32_1 = arith.constant 0 : i32
    return %arg0, %c0_i32, %c0_i32_0 : i32, i32, i32
  }
  func.func @transform_7(%arg0: i32, %arg1: i32) -> (i32, i32, i32) {
    %c0_i32 = arith.constant 0 : i32
    %c0_i32_0 = arith.constant 0 : i32
    %c0_i32_1 = arith.constant 0 : i32
    return %arg0, %c0_i32, %c0_i32_0 : i32, i32, i32
  }
  func.func @transform_8(%arg0: i32, %arg1: i32) -> (i32, i32, i32) {
    %c0_i32 = arith.constant 0 : i32
    %c0_i32_0 = arith.constant 0 : i32
    %c0_i32_1 = arith.constant 0 : i32
    return %arg0, %c0_i32, %c0_i32_0 : i32, i32, i32
  }
  func.func @transform_9(%arg0: i32, %arg1: i32) -> (i32, i32, i32) {
    %c0_i32 = arith.constant 0 : i32
    %c0_i32_0 = arith.constant 0 : i32
    %c0_i32_1 = arith.constant 0 : i32
    return %arg0, %c0_i32, %c0_i32_0 : i32, i32, i32
  }
  func.func @transform_10(%arg0: i32, %arg1: i32) -> (i32, i32, i32) {
    %c0_i32 = arith.constant 0 : i32
    %c0_i32_0 = arith.constant 0 : i32
    %c0_i32_1 = arith.constant 0 : i32
    return %arg0, %c0_i32, %c0_i32_0 : i32, i32, i32
  }
  func.func @transform_11(%arg0: i32, %arg1: i32) -> (i32, i32, i32) {
    %c0_i32 = arith.constant 0 : i32
    %c0_i32_0 = arith.constant 0 : i32
    return %arg0, %arg1, %c0_i32 : i32, i32, i32
  }
}

</mosaic_0001>

<bundles_post_ra>
// kernel: squeeze.5
= control target key start
LH: loop header
LB: loop body
LE: loop exit
PB: predicated region body
PF: predicated region fallthrough
CT: control target
= control target key end

     0   :  { %s59_s8 = smov 104   ;;  %vm7_vm0 = vcmask 64512   ;;  %s60_s9 = smov 112   ;;  %s86_s0 = inlined_call_operand.vmem [shape: f32[1,4,32], index: 0, kind: input, shape index: {}]   ;;  %s87_s1 = inlined_call_operand.vmem [shape: f32[4,4,8], index: 1, kind: output, shape index: {}]  }
   0x1   :  { %v4_v0 = vld [vmem:[%s86_s0] sm:$0xf]  ;;  %s58_s0 = smov 120  }
   0x2   :  { %5 = vst [vmem:[#allocation1] sm:$0xf] %v4_v0 }
   0x9   :  { %v9_v1 = vld [vmem:[#allocation1] sm:$0xf]  }
   0xa   :  { %v21_v2 = vld [vmem:[#allocation1] sm:$0xf]   ;;  %10 = vrot.lane.b32.xlu0 %v9_v1, %s58_s0 }
   0xb   :  { %22 = vrot.lane.b32.xlu1 %v21_v2, %s59_s8  ;;  %v6_v3 = vld [vmem:[#allocation1] sm:$0xf]  }
   0xc   :  { %v15_v4 = vld [vmem:[#allocation1] sm:$0xf]   ;;  %8 = vst.msk [vmem:[#allocation0] ss:$8 sm:$0xf] %vm7_vm0, %v6_v3  }
   0xe   :  { %16 = vrot.lane.b32.xlu0 %v15_v4, %s60_s9 }
  0x7c   :  { %v11_v5 = vpop.permute.xlu0 %10  }
  0x7d   :  { %v23_v6 = vpop.permute.xlu1 %22   ;;  %14 = vst.msk [vmem:[#allocation0 + $0x1] ss:$8 sm:$0xf] %vm7_vm0, %v11_v5  }
  0x7e   :  { %26 = vst.msk [vmem:[#allocation0 + $0x3] ss:$8 sm:$0xf] %vm7_vm0, %v23_v6  }
  0x80   :  { %v17_v7 = vpop.permute.xlu0 %16  }
  0x81   :  { %20 = vst.msk [vmem:[#allocation0 + $0x2] ss:$8 sm:$0xf] %vm7_vm0, %v17_v7  }
  0x88   :  { %v30_v8 = vld [vmem:[#allocation0] sm:$0xf]  ;;  %v34_v9 = vld [vmem:[#allocation0 + $0x8] sm:$0xf]  ;;  %v39_v10 = vld [vmem:[#allocation0 + $0x10] sm:$0xf] }
  0x89   :  { %32 = vst [vmem:[%s87_s1] sm:$0xf] %v30_v8  ;;  %52 = vst [vmem:[%s87_s1 + $0x4] sm:$0xf] %v34_v9  ;;  %v45_v11 = vld [vmem:[#allocation0 + $0x18] sm:$0xf] }
  0x8a   :  { %53 = vst [vmem:[%s87_s1 + $0x8] sm:$0xf] %v39_v10  ;;  %54 = vst [vmem:[%s87_s1 + $0xc] sm:$0xf] %v45_v11 }

// kernel: reverse.1
= control target key start
LH: loop header
LB: loop body
LE: loop exit
PB: predicated region body
PF: predicated region fallthrough
CT: control target
= control target key end

     0   :  { %v63_v4 = vld [vmem:[#allocation1 + $0x18] sm:$0xf]  ;;  %v73_v5 = vld [vmem:[#allocation1 + $0x10] sm:$0xf]  ;;  %v83_v6 = vld [vmem:[#allocation1 + $0x8] sm:$0xf]  ;;  %v100_v8 = vlaneseq  ;;  %s274_s0 = inlined_call_operand.vmem [shape: f32[4,3,8], index: 0, kind: input, shape index: {}]   ;;  %s275_s1 = inlined_call_operand.vmem [shape: f32[4,3,8], index: 1, kind: output, shape index: {}]  }
   0x1   :  { %v18_v0 = vld [vmem:[%s274_s0] sm:$0xf]  ;;  %v20_v1 = vld [vmem:[%s274_s0 + $0x4] sm:$0xf]  ;;  %v22_v2 = vld [vmem:[%s274_s0 + $0x8] sm:$0xf] }
   0x2   :  { %19 = vst [vmem:[#allocation1 + $0x4] sm:$0xf] %v18_v0  ;;  %21 = vst [vmem:[#allocation1 + $0xc] sm:$0xf] %v20_v1  ;;  %v24_v3 = vld [vmem:[%s274_s0 + $0xc] sm:$0xf] }
   0x3   :  { %23 = vst [vmem:[#allocation1 + $0x14] sm:$0xf] %v22_v2  ;;  %25 = vst [vmem:[#allocation1 + $0x1c] sm:$0xf] %v24_v3  ;;  %v90_v7 = vld [vmem:[#allocation1] sm:$0xf] }
   0x4   :  { %65 = vst [vmem:[#allocation0 + $0x30] sm:$0xf] %v63_v4  ;;  %75 = vst [vmem:[#allocation0 + $0x20] sm:$0xf] %v73_v5  ;;  %v101_v20 = vshrl.u32 %v100_v8, 7 }
   0x5   :  { %85 = vst [vmem:[#allocation0 + $0x10] sm:$0xf] %v83_v6  ;;  %91 = vst [vmem:[#allocation0] sm:$0xf] %v90_v7 }
   0x6   :  { %vm102_vm0 = vcmp.lt.s32.totalorder %v101_v20, 3 }
   0x9   :  { %v78_v10 = vld [vmem:[#allocation1 + $0xc] sm:$0xf]  ;;  %v87_v11 = vld [vmem:[#allocation1 + $0x4] sm:$0xf] }
   0xa   :  { %v68_v9 = vld [vmem:[#allocation1 + $0x14] sm:$0xf]  ;;  %v58_v12 = vld [vmem:[#allocation1 + $0x1c] sm:$0xf]  ;;  %80 = vst [vmem:[#allocation0 + $0x18] sm:$0xf] %v78_v10 }
   0xb   :  { %70 = vst [vmem:[#allocation0 + $0x28] sm:$0xf] %v68_v9  ;;  %89 = vst [vmem:[#allocation0 + $0x8] sm:$0xf] %v87_v11  ;;  %v121_v13 = vld [vmem:[#allocation0 + $0x27] ss:$-1 sm:$0xff] }
   0xc   :  { %v135_v14 = vld [vmem:[#allocation0 + $0x37] ss:$-1 sm:$0xff]  ;;  %60 = vst [vmem:[#allocation0 + $0x38] sm:$0xf] %v58_v12  ;;  %v93_v15 = vld [vmem:[#allocation0 + $0x7] ss:$-1 sm:$0xff] }
   0xd   :  { %v107_v16 = vld [vmem:[#allocation0 + $0x17] ss:$-1 sm:$0xff]  ;;  %v122_v17 = vrot.slane %v121_v13, 5  ;;  %v136_v18 = vrot.slane %v135_v14, 5  ;;  %v94_v19 = vrot.slane %v93_v15, 5 }
   0xe   :  { %v108_v21 = vrot.slane %v107_v16, 5 }
   0xf   :  { %123 = vst [vmem:[#allocation2 + $0x10] sm:$0xff] %v122_v17  ;;  %137 = vst [vmem:[#allocation2 + $0x18] sm:$0xff] %v136_v18 }
  0x10   :  { %95 = vst [vmem:[#allocation2] sm:$0xff] %v94_v19  ;;  %109 = vst [vmem:[#allocation2 + $0x8] sm:$0xff] %v108_v21 }
  0x11   :  { %v112_v23 = vld [vmem:[#allocation0 + $0x1f] ss:$-1 sm:$0xff] }
  0x12   :  { %v98_v22 = vld [vmem:[#allocation0 + $0xf] ss:$-1 sm:$0xff]  ;;  %v113_v26 = vrot.slane %v112_v23, 5 }
  0x13   :  { %v126_v24 = vld [vmem:[#allocation0 + $0x2f] ss:$-1 sm:$0xff]  ;;  %v99_v25 = vrot.slane %v98_v22, 5  ;;  %v140_v28 = vld [vmem:[#allocation0 + $0x3f] ss:$-1 sm:$0xff] }
  0x14   :  { %v127_v27 = vrot.slane %v126_v24, 5  ;;  %v141_v29 = vrot.slane %v140_v28, 5  ;;  %117 = vst.msk [vmem:[#allocation2 + $0x8] sm:$0xff] %vm102_vm0, %v113_v26 }
  0x15   :  { %103 = vst.msk [vmem:[#allocation2] sm:$0xff] %vm102_vm0, %v99_v25 }
  0x16   :  { %131 = vst.msk [vmem:[#allocation2 + $0x10] sm:$0xff] %vm102_vm0, %v127_v27  ;;  %145 = vst.msk [vmem:[#allocation2 + $0x18] sm:$0xff] %vm102_vm0, %v141_v29 }
  0x1b   :  { %v153_v31 = vld [vmem:[#allocation2 + $0x8] sm:$0xf] }
  0x1c   :  { %v149_v30 = vld [vmem:[#allocation2] sm:$0xf]  ;;  %156 = vst [vmem:[#allocation3 + $0x4] sm:$0xf] %v153_v31 }
  0x1d   :  { %v158_v32 = vld [vmem:[#allocation2 + $0x10] sm:$0xf]  ;;  %151 = vst [vmem:[#allocation3] sm:$0xf] %v149_v30  ;;  %v164_v33 = vld [vmem:[#allocation2 + $0x18] sm:$0xf] }
  0x1e   :  { %162 = vst [vmem:[#allocation3 + $0x8] sm:$0xf] %v158_v32  ;;  %168 = vst [vmem:[#allocation3 + $0xc] sm:$0xf] %v164_v33 }
  0x24   :  { %v184_v34 = vld [vmem:[#allocation3] sm:$0xff]  }
  0x25   :  { %185 = vst [vmem:[%s275_s1] sm:$0xff] %v184_v34   ;;  %v188_v35 = vld [vmem:[#allocation3 + $0x8] sm:$0xff]  }
  0x26   :  { %189 = vst [vmem:[%s275_s1 + $0x8] sm:$0xff] %v188_v35  }

// kernel: bidirectional_path_generator.1
= control target key start
LH: loop header
LB: loop body
LE: loop exit
PB: predicated region body
PF: predicated region fallthrough
CT: control target
= control target key end

     0   :  { %s1480_s17 = smov 0   ;;  %s1482_s18 = smov 0   ;;  %s1612_s0 = inlined_call_operand.vmem [shape: f32[2,8,16], index: 0, kind: input, shape index: {}]   ;;  %s1613_s1 = inlined_call_operand.vmem [shape: bf16[2,16,256], index: 1, kind: input, shape index: {}]   ;;  %s1614_s2 = inlined_call_operand.vmem [shape: f32[2,1,256], index: 2, kind: input, shape index: {}]   ;;  %s1615_s3 = inlined_call_operand.vmem [shape: f32[2,1,256], index: 3, kind: input, shape index: {}]   ;;  %s1616_s4 = inlined_call_operand.vmem [shape: f32[2,1,256], index: 4, kind: input, shape index: {}]   ;;  %s1617_s5 = inlined_call_operand.vmem [shape: bf16[2,256,128], index: 5, kind: input, shape index: {}]   ;;  %s1618_s6 = inlined_call_operand.vmem [shape: f32[2,1,128], index: 6, kind: input, shape index: {}]   ;;  %s1619_s7 = inlined_call_operand.vmem [shape: f32[2,1,128], index: 7, kind: input, shape index: {}]   ;;  %s1620_s8 = inlined_call_operand.vmem [shape: f32[2,1,128], index: 8, kind: input, shape index: {}]   ;;  %s1621_s9 = inlined_call_operand.vmem [shape: f32[2,128,128], index: 9, kind: input, shape index: {}]   ;;  %s1622_s10 = inlined_call_operand.vmem [shape: f32[2,1,128], index: 10, kind: input, shape index: {}]   ;;  %s1623_s11 = inlined_call_operand.vmem [shape: f32[2,8,128], index: 11, kind: output, shape index: {}]  }
   0x1   :  { %s1484_s19 = smov 0  }
   0x2 LB: > { %s33_s20 = sadd.s32 1, %s1410_s18  ;;  %p1197_p0 = scmp.ge.s32.totalorder %s1414_s19, 1  ;;  %s1414_s19 = sphi %s1484_s19, %s21_s19   ;;  %s1410_s18 = sphi %s1482_s18, %s1625_s18   ;;  %s1406_s17 = sphi %s1480_s17, %s1624_s17  }
   0x3   : > { %p35_p1 = scmp.ge.s32.totalorder %s33_s20, 2  ;;  %p444_p2 = scmp.lt.s32.totalorder %s1414_s19, 3 }
   0x5   : > { %s1627_s20 = smov (%p35_p1, %s33_s20), 0  ;;  %p445_p3 = pnand %p1197_p0, %p444_p2 }
   0x6   : > { %p527_p4 = scmp.lt.s32.totalorder (!%p445_p3), %s1406_s17, 1  ;;  %v1416_v0 = vmov (!%p445_p3), 0   ;;  %vm607_vm0 = vcmask (!%p445_p3), 130048   ;;  %v587_v5 = vlaneseq (!%p445_p3)  ;;  %vm1418_vm1 = vmmov (!%p445_p3), 0  }
   0x7   : > { %448 = sbr.rel (%p445_p3) target bundleno = 1332 (0x534), region = 64  ;;  %643 = vmatprep.mubr.bf16.mxu0 (!%p445_p3), %v1416_v0 }
   0x8   : > { %v588_v6 = vshrl.u32 (!%p445_p3), %v587_v5, 7 }
   0xa   : > { %v1525_v7 = vsub.s32 (!%p445_p3), 0, %v588_v6  ;;  %v1527_v9 = vsub.s32 (!%p445_p3), 1, %v588_v6 }
   0xe   : > { %s1629_s17 = smov (!%p527_p4, %s1406_s17), 1 }
   0xf   : > { %s1234_s21 = sshll.u32 %s1629_s17, 4  ;;  %s1235_s22 = sshll.u32 %s1629_s17, 7 }
  0x10   : > { %s538_s25 = scalar_lea.vmem %s1613_s1, %s1234_s21  ;;  %s1510_s28 = scalar_lea.vmem %s1617_s5, %s1235_s22 }
  0x11   : > { %v1363_v1 = vld [vmem:[%s538_s25 + $0x4] ss:$8 sps:$4 sm:$0xff]   ;;  %s1198_s29 = sshll.u32 %s1629_s17, 3  ;;  %v1365_v2 = vld [vmem:[%s538_s25] ss:$8 sps:$4 sm:$0xff]   ;;  %s1519_s14 = sshll.u32 %s1629_s17, 1 }
  0x12   : > { %s533_s13 = scalar_lea.vmem %s1612_s0, %s1198_s29  ;;  %611 = vmatprep.subr.bf16.mxu0 %v1363_v1  ;;  %s542_s21 = scalar_lea.vmem %s1614_s2, %s1519_s14  ;;  %v1366_v26 = vld [vmem:[%s1510_s28 + $0x40] sm:$0xff]   ;;  %v1368_v28 = vld [vmem:[%s1510_s28 + $0x48] sm:$0xff]   ;;  %v1370_v30 = vld [vmem:[%s1510_s28 + $0x50] sm:$0xff]  }
  0x13   : > { %v581_v3 = vld [vmem:[%s533_s13] sm:$0xff]  ;;  %612 = vmatpush1.bf16.msra.mxu0 %v1365_v2  ;;  %1237 = vmatprep.subr.bf16.mxu1 %v1366_v26  ;;  %v1369_v29 = vld [vmem:[%s1510_s28 + $0x8] sm:$0xff]   ;;  %v1371_v31 = vld [vmem:[%s1510_s28 + $0x10] sm:$0xff]   ;;  %s546_s25 = scalar_lea.vmem %s1615_s3, %s1519_s14  ;;  %s550_s30 = scalar_lea.vmem %s1616_s4, %s1519_s14 }
  0x14   : > { %v582_v4 = vpack.c.bf16 %v581_v3, %v581_v3  ;;  %v585_v8 = vld [vmem:[%s542_s21] sm:$0x3]  ;;  %v1372_v32 = vld [vmem:[%s1510_s28 + $0x58] sm:$0xff]   ;;  %v1376_v36 = vld [vmem:[%s1510_s28 + $0x68] sm:$0xff]   ;;  %s558_s13 = scalar_lea.vmem %s1618_s6, %s1629_s17  ;;  %s1568_s16 = scalar_lea.vmem %s1621_s9, %s1235_s22 }
  0x15   : > { %v590_v10 = vrot.slane %v585_v8, %v1525_v7  ;;  %v594_v11 = vrot.slane %v585_v8, %v1527_v9  ;;  %v1367_v27 = vld [vmem:[%s1510_s28] sm:$0xff]   ;;  %v1373_v33 = vld [vmem:[%s1510_s28 + $0x18] sm:$0xff]   ;;  %v1377_v37 = vld [vmem:[%s1510_s28 + $0x28] sm:$0xff]   ;;  %s561_s23 = scalar_lea.vmem %s1619_s7, %s1629_s17  ;;  %s564_s26 = scalar_lea.vmem %s1620_s8, %s1629_s17 }
  0x16   : > { %1211 = vmatmul.mubr.msk.bf16.vlgmr.msra.gmra.mrb[0].mxu0 %vm607_vm0, %v582_v4  ;;  %1238 = vmatpush3.bf16.msra.mxu1 %v1367_v27  ;;  %v1374_v34 = vld [vmem:[%s1510_s28 + $0x60] sm:$0xff]   ;;  %v1378_v38 = vld [vmem:[%s1510_s28 + $0x70] sm:$0xff]   ;;  %v1380_v40 = vld [vmem:[%s1510_s28 + $0x78] sm:$0xff]   ;;  %s579_s14 = scalar_lea.vmem %s1623_s11, %s1198_s29 }
  0x17   : > { %1239 = vmatprep.subr.bf16.mxu1 %v1368_v28  ;;  %v1375_v35 = vld [vmem:[%s1510_s28 + $0x20] sm:$0xff]   ;;  %v1379_v39 = vld [vmem:[%s1510_s28 + $0x30] sm:$0xff]   ;;  %v1381_v41 = vld [vmem:[%s1510_s28 + $0x38] sm:$0xff]   ;;  %s572_s28 = scalar_lea.vmem %s1622_s10, %s1629_s17 }
  0x18   : > { %v652_v45 = vld [vmem:[%s546_s25] sm:$0x3]  ;;  %v923_v27 = vld [vmem:[%s1568_s16 + $0x30] sm:$0xff]  ;;  %v924_v28 = vld [vmem:[%s1568_s16 + $0x38] sm:$0xff] }
  0x19   : > { %v653_v46 = vld [vmem:[%s550_s30] sm:$0x3]  ;;  %v675_v47 = vrot.slane %v652_v45, %v1525_v7  ;;  %v679_v48 = vrot.slane %v652_v45, %v1527_v9 }
  0x1a   : > { %1240 = vmatpush3.bf16.msra.mxu1 %v1369_v29  ;;  %v688_v52 = vrot.slane %v653_v46, %v1525_v7  ;;  %v692_v53 = vrot.slane %v653_v46, %v1527_v9  ;;  %v1212_v8 = vld [vmem:[%s558_s13] ss:$0 sm:$0xff]  ;;  %v1321_v29 = vpack.c.bf16 %v924_v28, %v923_v27 }
  0x1b   : > { %1241 = vmatprep.subr.bf16.mxu1 %v1370_v30  ;;  %v1419_v30 = vmov 0.0  }
  0x1c   : > { %1308 = vmatprep.mubr.msk.f32.mxu0 %vm1418_vm1, %v1419_v30 }
  0x1e   : > { %1242 = vmatpush3.bf16.msra.mxu1 %v1371_v31  ;;  %v925_v31 = vld [vmem:[%s1568_s16 + $0x40] sm:$0xff] }
  0x1f   : > { %1243 = vmatprep.subr.bf16.mxu1 %v1372_v32  ;;  %v926_v32 = vld [vmem:[%s1568_s16 + $0x48] sm:$0xff] }
  0x22   : > { %1244 = vmatpush3.bf16.msra.mxu1 %v1373_v33  ;;  %v1324_v33 = vpack.c.bf16 %v926_v32, %v925_v31 }
  0x23   : > { %1245 = vmatprep.subr.bf16.mxu1 %v1374_v34  ;;  %v927_v34 = vld [vmem:[%s1568_s16 + $0x50] sm:$0xff] }
  0x26   : > { %1246 = vmatpush3.bf16.msra.mxu1 %v1375_v35  ;;  %v928_v35 = vld [vmem:[%s1568_s16 + $0x58] sm:$0xff] }
  0x27   : > { %1247 = vmatprep.subr.bf16.mxu1 %v1376_v36  ;;  %v1327_v36 = vpack.c.bf16 %v928_v35, %v927_v34 }
  0x2a   : > { %1248 = vmatpush3.bf16.msra.mxu1 %v1377_v37  ;;  %v929_v37 = vld [vmem:[%s1568_s16 + $0x60] sm:$0xff] }
  0x2b   : > { %1249 = vmatprep.subr.bf16.mxu1 %v1378_v38  ;;  %v930_v38 = vld [vmem:[%s1568_s16 + $0x68] sm:$0xff] }
  0x2e   : > { %1250 = vmatpush3.bf16.msra.mxu1 %v1379_v39  ;;  %v1330_v39 = vpack.c.bf16 %v930_v38, %v929_v37 }
  0x2f   : > { %1251 = vmatprep.subr.bf16.mxu1 %v1380_v40  ;;  %v931_v40 = vld [vmem:[%s1568_s16 + $0x70] sm:$0xff] }
  0x32   : > { %1252 = vmatpush3.bf16.msra.mxu1 %v1381_v41  ;;  %v932_v41 = vld [vmem:[%s1568_s16 + $0x78] sm:$0xff] }
  0xe9   : > { %v645_v12 = vpop.f32.mrb[0].mxu0 }
  0xea   : > { %v646_v13 = vadd.f32 %v645_v12, %v590_v10  ;;  %v647_v14 = vpop.f32.mrb[1].mxu0 }
  0xeb   : > { %v648_v15 = vadd.f32 %v647_v14, %v594_v11  ;;  %v649_v16 = vpop.f32.mrb[2].mxu0 }
  0xec   : > { %v650_v17 = vpop.f32.mrb[3].mxu0 }
  0xed   : > { %v654_v18 = vadd.f32 %v648_v15, %v646_v13  ;;  %v917_v17 = vld [vmem:[%s1568_s16] sm:$0xff] }
  0xef   : > { %655 = vadd.xlane.f32.xlu0 %v654_v18  ;;  %v918_v18 = vld [vmem:[%s1568_s16 + $0x8] sm:$0xff] }
 0x17c   : > { %v656_v19 = vpop.xlane.xlu0 %655 }
 0x17d   : > { %v658_v20 = vmul.f32 0.00390625, %v656_v19  ;;  %v1312_v19 = vpack.c.bf16 %v918_v18, %v917_v17 }
 0x17f   : > { %v659_v21 = vsub.f32 %v646_v13, %v658_v20  ;;  %v660_v22 = vsub.f32 %v648_v15, %v658_v20  ;;  %v1417_v20 = vmov 0.0|0.0  }
 0x180   : > { %1311 = vmatprep.subr.bf16.mxu0 %v1417_v20 }
 0x181   : > { %v661_v23 = vmul.f32 %v659_v21, %v659_v21  ;;  %v662_v24 = vmul.f32 %v660_v22, %v660_v22  ;;  %1313 = vmatpush3.bf16.msra.mxu0 %v1312_v19 }
 0x182   : > { %1314 = vmatprep.subr.bf16.mxu0 %v1417_v20 }
 0x183   : > { %v663_v25 = vadd.f32 %v662_v24, %v661_v23  ;;  %v921_v24 = vld [vmem:[%s1568_s16 + $0x20] sm:$0xff] }
 0x185   : > { %664 = vadd.xlane.f32.xlu0 %v663_v25  ;;  %v922_v25 = vld [vmem:[%s1568_s16 + $0x28] sm:$0xff] }
 0x186   : > { %v1318_v26 = vpack.c.bf16 %v922_v25, %v921_v24 }
 0x212   : > { %v665_v42 = vpop.xlane.xlu0 %664 }
 0x213   : > { %v666_v43 = vmul.f32 0.00390625, %v665_v42  ;;  %v1333_v42 = vpack.c.bf16 %v932_v41, %v931_v40 }
 0x215   : > { %v667_v44 = vadd.f32 1e-05, %v666_v43 }
 0x217   : > { %1382 = vrsqrt.f32 %v667_v44 }
 0x221   : > { %v1383_v49 = vpop.eup %1382 }
 0x222   : > { %v669_v50 = vmul.f32 %v1383_v49, %v659_v21  ;;  %v670_v51 = vmul.f32 %v1383_v49, %v660_v22  ;;  %v919_v21 = vld [vmem:[%s1568_s16 + $0x10] sm:$0xff]  ;;  %v920_v22 = vld [vmem:[%s1568_s16 + $0x18] sm:$0xff]  ;;  %v1230_v49 = vld [vmem:[%s564_s26] ss:$0 sm:$0xff] }
 0x223   : > { %v1315_v23 = vpack.c.bf16 %v920_v22, %v919_v21 }
 0x224   : > { %v683_v54 = vmul.f32 %v679_v48, %v670_v51  ;;  %v682_v55 = vmul.f32 %v675_v47, %v669_v50  ;;  %v1229_v47 = vld [vmem:[%s561_s23] ss:$0 sm:$0xff] }
 0x225   : > { %1316 = vmatpush3.bf16.msra.mxu0 %v1315_v23 }
 0x226   : > { %v696_v56 = vadd.f32 %v692_v53, %v683_v54  ;;  %v695_v57 = vadd.f32 %v688_v52, %v682_v55  ;;  %1317 = vmatprep.subr.bf16.mxu0 %v1417_v20 }
 0x228   : > { %v700_v58 = vmul.f32 0.70710677, %v696_v56  ;;  %v699_v59 = vmul.f32 0.70710677, %v695_v57  ;;  %v698_v62 = vmul.f32 0.5, %v696_v56  ;;  %v697_v0 = vmul.f32 0.5, %v695_v57 }
 0x229   : > { %1319 = vmatpush3.bf16.msra.mxu0 %v1318_v26  ;;  %v1231_v57 = vld [vmem:[%s572_s28] ss:$0 sm:$0xff] }
 0x22a   : > { %1384 = verf.f32 %v700_v58  ;;  %1320 = vmatprep.subr.bf16.mxu0 %v1417_v20 }
 0x22b   : > { %1386 = verf.f32 %v699_v59 }
 0x22d   : > { %1322 = vmatpush3.bf16.msra.mxu0 %v1321_v29 }
 0x22e   : > { %1323 = vmatprep.subr.bf16.mxu0 %v1417_v20 }
 0x231   : > { %1325 = vmatpush3.bf16.msra.mxu0 %v1324_v33 }
 0x232   : > { %1326 = vmatprep.subr.bf16.mxu0 %v1417_v20 }
 0x234   : > { %v1385_v60 = vpop.eup %1384 }
 0x235   : > { %v1387_v61 = vpop.eup %1386  ;;  %v704_v63 = vadd.f32 1.0, %v1385_v60  ;;  %1328 = vmatpush3.bf16.msra.mxu0 %v1327_v36 }
 0x236   : > { %v703_v1 = vadd.f32 1.0, %v1387_v61  ;;  %1329 = vmatprep.subr.bf16.mxu0 %v1417_v20 }
 0x237   : > { %v706_v2 = vmul.f32 %v704_v63, %v698_v62 }
 0x238   : > { %v705_v3 = vmul.f32 %v703_v1, %v697_v0 }
 0x239   : > { %v708_v4 = vpack.c.bf16 %v706_v2, %v706_v2  ;;  %1331 = vmatpush3.bf16.msra.mxu0 %v1330_v39 }
 0x23a   : > { %v707_v5 = vpack.c.bf16 %v705_v3, %v705_v3  ;;  %1332 = vmatprep.subr.bf16.mxu0 %v1417_v20 }
 0x23b   : > { %876 = vmatprep.mubr.bf16.mxu1 %v708_v4 }
 0x23c   : > { %877 = vmatmul.mubr.bf16.vlgmr.msra.gmra.mrb[0].mxu1 %v707_v5 }
 0x23d   : > { %1334 = vmatpush3.bf16.msra.mxu0 %v1333_v42 }
 0x30f   : > { %v1253_v6 = vpop.f32.mrb[0].mxu1 }
 0x310   : > { %v1254_v7 = vpop.f32.mrb[1].mxu1 }
 0x311   : > { %v1255_v9 = vadd.f32 %v1254_v7, %v1253_v6  ;;  %v1256_v10 = vpop.f32.mrb[2].mxu1 }
 0x312   : > { %v1257_v11 = vpop.f32.mrb[3].mxu1 }
 0x313   : > { %v879_v12 = vadd.f32 %v1255_v9, %v1212_v8 }
 0x315   : > { %886 = vadd.xlane.f32.xlu1 %v879_v12 }
 0x3a2   : > { %v887_v13 = vpop.xlane.xlu1 %886 }
 0x3a3   : > { %v889_v14 = vmul.f32 0.0078125, %v887_v13 }
 0x3a5   : > { %v890_v15 = vsub.f32 %v879_v12, %v889_v14 }
 0x3a7   : > { %v891_v16 = vmul.f32 %v890_v15, %v890_v15 }
 0x3a9   : > { %892 = vadd.xlane.f32.xlu1 %v891_v16 }
 0x436   : > { %v893_v43 = vpop.xlane.xlu1 %892 }
 0x437   : > { %v894_v44 = vmul.f32 0.0078125, %v893_v43 }
 0x439   : > { %v895_v45 = vadd.f32 1e-05, %v894_v44 }
 0x43b   : > { %1388 = vrsqrt.f32 %v895_v45 }
 0x445   : > { %v1389_v46 = vpop.eup %1388 }
 0x446   : > { %v897_v48 = vmul.f32 %v1389_v46, %v890_v15 }
 0x448   : > { %v904_v50 = vmul.f32 %v1229_v47, %v897_v48 }
 0x44a   : > { %v911_v51 = vadd.f32 %v1230_v49, %v904_v50 }
 0x44c   : > { %v913_v52 = vmul.f32 0.70710677, %v911_v51  ;;  %v912_v54 = vmul.f32 0.5, %v911_v51 }
 0x44e   : > { %1390 = verf.f32 %v913_v52 }
 0x458   : > { %v1391_v53 = vpop.eup %1390 }
 0x459   : > { %v915_v55 = vadd.f32 1.0, %v1391_v53 }
 0x45b   : > { %v916_v56 = vmul.f32 %v915_v55, %v912_v54 }
 0x45d   : > { %1309 = vmatmul.mubr.f32.vlgmr.msra.gmra.mrb[4].mxu0 %v916_v56 }
 0x530   : > { %v1006_v58 = vpop.f32.mrb[4].mxu0 }
 0x531   : > { %v1007_v59 = vadd.f32 %v1231_v57, %v1006_v58  ;;  %v1310_v60 = vpop.f32.mrb[5].mxu0 }
 0x533   : > { %1010 = vst [vmem:[%s579_s14] sm:$0xff] %v1007_v59 }
 0x534 PF: > { %s21_s19 = sadd.s32 1, %s1414_s19   ;;  %s1624_s17 = smov %s1410_s18 }
 0x535   : > { %p18_p5 = scmp.ge.s32.totalorder %s21_s19, 4   ;;  %s1625_s18 = smov %s1627_s20 }
 0x537   :  { %20 = sbr.rel (!%p18_p5) target bundleno = 2 (0x2), region = 124 }

</bundles_post_ra>
